<compile_context>
chip_gen: v7x
topology: tpu7x:2x2x1
jax: 0.10.0
libtpu: 0.0.40
codegen_flags: <defaults>
</compile_context>

<pallas_src>
import jax
import jax.numpy as jnp
import numpy as np
from jax.experimental import pallas as pl
from jax.experimental.pallas import tpu as pltpu

CHANNELS = (128, 64, 64)   # fixed in the module: self.channels = [128, 64, 64]
OUT_H, OUT_W = 17, 8       # fixed interpolate target


def _round_up(x, m):
    return ((x + m - 1) // m) * m


def resize_nearest_nchw(x, out_h, out_w):
    """PyTorch F.interpolate(mode='nearest') semantics: src = floor(dst * in/out)."""
    _, _, h, w = x.shape
    idx_h = jnp.clip(jnp.floor(jnp.arange(out_h) * (h / out_h)).astype(jnp.int32), 0, h - 1)
    idx_w = jnp.clip(jnp.floor(jnp.arange(out_w) * (w / out_w)).astype(jnp.int32), 0, w - 1)
    return x[:, :, idx_h, :][:, :, :, idx_w]


def _cf_attention_kernel(s_ref, x_ref, out_ref):
    # s_ref:   (K, C_all)      bf16   (resident across all P tiles, constant index_map)
    # x_ref:   (TILE_P, C_all) bf16   (pipelined over the P grid axis)
    # out_ref: (K, TILE_P)     f32    (lane-dense store)
    out_ref[...] = jax.lax.dot_general(
        s_ref[...], x_ref[...],
        dimension_numbers=(((1,), (1,)), ((), ())),   # contract over channels
        preferred_element_type=jnp.float32)


def cf_convolved_attention(img_feats, text_feat, weights, biases, num_sent_fc, *, tile_p=2048):
    """weights[i][k]: (CHANNELS[i], Q)   biases[i][k]: (CHANNELS[i],)   (module layer i + k*3)."""
    assert text_feat.shape[0] == 1, (
        "CF_ConvolvedAttention's in-place broadcast requires text_feat batch size 1")
    n = img_feats[0].shape[0]
    k = num_sent_fc
    p = n * OUT_H * OUT_W

    # ---- layout plumbing (pure JAX, negligible): fuse the 3 scales along channels ----
    xs = []
    for f in img_feats:
        r = resize_nearest_nchw(f.astype(jnp.float32), OUT_H, OUT_W)           # (N, C_i, 17, 8)
        xs.append(jnp.transpose(r, (0, 2, 3, 1)).reshape(p, f.shape[1]))        # (P, C_i)
    x_all = jnp.concatenate(xs, axis=-1)                                        # (P, 256)
    c_all = x_all.shape[1]

    # ---- tiny text-side Linear: S[k] = concat_i (text @ W_{i,k}^T + b_{i,k}) -> (K, 256) ----
    # Hoisted out of the P-tiled grid (invariant across tiles; also safe under "parallel" cores).
    s_rows = []
    for kk in range(num_sent_fc):
        parts = [
            jnp.dot(text_feat.astype(jnp.float32), weights[i][kk].T.astype(jnp.float32),
                    precision=jax.lax.Precision.HIGHEST)
            + biases[i][kk].astype(jnp.float32)[None, :]
            for i in range(len(CHANNELS))
        ]
        s_rows.append(jnp.concatenate(parts, axis=-1))                          # (1, 256)
    s_mat = jnp.concatenate(s_rows, axis=0)                                     # (K, 256)

    # bf16 inputs: half the DMA bytes, native MXU dtype; accumulation stays f32 in-kernel.
    x_all = x_all.astype(jnp.bfloat16)
    s_mat = s_mat.astype(jnp.bfloat16)

    # ---- P-tiled grid (lane axis of the output => tile must be a multiple of 128) ----
    tp = min(tile_p, _round_up(p, 128))
    p_pad = _round_up(p, tp)
    if p_pad != p:
        x_all = jnp.pad(x_all, ((0, p_pad - p), (0, 0)))
    grid = (p_pad // tp,)

    out = pl.pallas_call(
        _cf_attention_kernel,
        out_shape=jax.ShapeDtypeStruct((k, p_pad), jnp.float32),
        grid=grid,
        in_specs=[
            pl.BlockSpec((k, c_all), lambda i: (0, 0)),     # S: whole-array, resident
            pl.BlockSpec((tp, c_all), lambda i: (i, 0)),    # X: pipelined P tiles
        ],
        out_specs=pl.BlockSpec((k, tp), lambda i: (0, i)),  # lane-dense (K, P) output
        compiler_params=pltpu.CompilerParams(
            dimension_semantics=("parallel",)),
    )(s_mat, x_all)

    # (K, P) -> (K*N, 1, 17, 8); pure reshape (matches torch.cat over k along batch).
    out = out[:, :p].reshape(k * n, OUT_H, OUT_W)
    return out[:, None, :, :]


def reference(img_feats, text_feat, weights, biases, num_sent_fc):
    """Pure-JAX f32 mirror of the PyTorch forward (for correctness check)."""
    resized = [resize_nearest_nchw(f.astype(jnp.float32), OUT_H, OUT_W) for f in img_feats]
    outs = []
    for kk in range(num_sent_fc):
        att = jnp.zeros((resized[0].shape[0], 1, OUT_H, OUT_W), jnp.float32)
        for i in range(len(CHANNELS)):
            s = jnp.dot(text_feat, weights[i][kk].T,
                        precision=jax.lax.Precision.HIGHEST) + biases[i][kk]     # (1, C_i)
            att = att + jnp.einsum('nchw,oc->nohw', resized[i], s,
                                   precision=jax.lax.Precision.HIGHEST)
        outs.append(att)
    return jnp.concatenate(outs, axis=0)


if __name__ == "__main__":
    num_sent_fc = 2
    ques_feat_size = 32
    batch = 2

    key = jax.random.PRNGKey(0)
    keys = jax.random.split(key, 4 + 2 * num_sent_fc * len(CHANNELS))

    # img_feats: list of 3 NCHW maps with channels [128, 64, 64]; arbitrary spatial sizes
    img_shapes = [(batch, 128, 20, 10), (batch, 64, 14, 7), (batch, 64, 9, 6)]
    img_feats = [jax.random.normal(keys[i], s, jnp.float32) for i, s in enumerate(img_shapes)]
    text_feat = jax.random.normal(keys[3], (1, ques_feat_size), jnp.float32)

    # deterministic Linear params: weights[i][k]: (C_i, Q), biases[i][k]: (C_i,)
    weights, biases = [], []
    kidx = 4
    bound = 1.0 / np.sqrt(ques_feat_size)
    for i in range(len(CHANNELS)):
        w_k, b_k = [], []
        for kk in range(num_sent_fc):
            w_k.append(jax.random.uniform(keys[kidx], (CHANNELS[i], ques_feat_size),
                                          jnp.float32, -bound, bound)); kidx += 1
            b_k.append(jax.random.uniform(keys[kidx], (CHANNELS[i],),
                                          jnp.float32, -bound, bound)); kidx += 1
        weights.append(w_k)
        biases.append(b_k)

    # tile_p=128 exercises a multi-step pipelined grid even at this tiny P (= 2*17*8 = 272).
    out = cf_convolved_attention(img_feats, text_feat, weights, biases, num_sent_fc, tile_p=128)
    out = jax.block_until_ready(out)

    ref = reference(img_feats, text_feat, weights, biases, num_sent_fc)
    assert out.shape == (num_sent_fc * batch, 1, OUT_H, OUT_W), out.shape
    # Kernel runs bf16 inputs / f32 accumulation vs a pure-f32 HIGHEST reference:
    # tolerance sized for bf16 input rounding over a 256-long contraction.
    np.testing.assert_allclose(np.asarray(out), np.asarray(ref), rtol=2e-2, atol=1.5e-1)

    print("KERNEL_OK")
</pallas_src>

<mosaic_0001>
module attributes {stable_mosaic.version = 11 : i64} {
  func.func @_cf_attention_kernel(%arg0: i32, %arg1: memref<2x256xbf16, #tpu.memory_space<vmem>>, %arg2: memref<128x256xbf16, #tpu.memory_space<vmem>>, %arg3: memref<2x128xf32, #tpu.memory_space<vmem>>) attributes {dimension_semantics = [#tpu.dimension_semantics<parallel>], iteration_bounds = array<i64: 3>, scalar_prefetch = 0 : i64, scratch_operands = 0 : i64, tpu.core_type = #tpu.core_type<tc>, window_params = [{pipeline_mode = #tpu.pipeline_mode<synchronous>, transform_indices = @transform_0, window_bounds = array<i64: 2, 256>}, {transform_indices = @transform_1, window_bounds = array<i64: 128, 256>}, {transform_indices = @transform_2, window_bounds = array<i64: 2, 128>}]} {
    %c0 = arith.constant 0 : index
    %c0_0 = arith.constant 0 : index
    %0 = vector.load %arg1[%c0, %c0_0] : memref<2x256xbf16, #tpu.memory_space<vmem>>, vector<2x256xbf16>
    %c0_1 = arith.constant 0 : index
    %c0_2 = arith.constant 0 : index
    %1 = vector.load %arg2[%c0_1, %c0_2] : memref<128x256xbf16, #tpu.memory_space<vmem>>, vector<128x256xbf16>
    %cst = arith.constant dense<0.000000e+00> : vector<2x128xf32>
    %2 = tpu.matmul %0, %1, %cst {dimension_numbers = #tpu.dot_dimension_numbers<[1], [1], [0], [0], [0, 0, 1, 0], [], []>} : vector<2x256xbf16>, vector<128x256xbf16>, vector<2x128xf32> -> vector<2x128xf32>
    %c0_3 = arith.constant 0 : index
    %c0_4 = arith.constant 0 : index
    %3 = vector.load %arg3[%c0_3, %c0_4] : memref<2x128xf32, #tpu.memory_space<vmem>>, vector<2x128xf32>
    tpu.vector_store %arg3[%c0_3, %c0_4], %2 {strides = array<i32>} : memref<2x128xf32, #tpu.memory_space<vmem>>, vector<2x128xf32>,
    return
  }
  func.func @transform_0(%arg0: i32) -> (i32, i32) {
    %c0_i32 = arith.constant 0 : i32
    %c0_i32_0 = arith.constant 0 : i32
    %c0_i32_1 = arith.constant 0 : i32
    return %c0_i32, %c0_i32_0 : i32, i32
  }
  func.func @transform_1(%arg0: i32) -> (i32, i32) {
    %c0_i32 = arith.constant 0 : i32
    %c0_i32_0 = arith.constant 0 : i32
    return %arg0, %c0_i32 : i32, i32
  }
  func.func @transform_2(%arg0: i32) -> (i32, i32) {
    %c0_i32 = arith.constant 0 : i32
    %c0_i32_0 = arith.constant 0 : i32
    return %c0_i32, %arg0 : i32, i32
  }
}

</mosaic_0001>

<bundles_post_ra>
// kernel: tpu_custom_call.1
= control target key start
LH: loop header
LB: loop body
LE: loop exit
PB: predicated region body
PF: predicated region fallthrough
CT: control target
= control target key end

     0   :  { %7 = vsyncpa [#allocation3], 0  ;;  %s920_s0 = inlined_call_operand.hbm [shape: bf16[2,256], index: 0, kind: input, shape index: {}]   ;;  %s921_s1 = inlined_call_operand.hbm [shape: bf16[384,256], index: 1, kind: input, shape index: {}]   ;;  %s922_s2 = inlined_call_operand.hbm [shape: f32[2,384], index: 2, kind: output, shape index: {}]  }
   0x1   :  { %8 = vsyncpa [#allocation6], 0 }
   0x2   :  { %10 = vsyncpa [#allocation6 + $0x1], 0 }
   0x3   :  { %11 = vsyncpa [#allocation4], 0 }
   0x4   :  { %13 = vsyncpa [#allocation4 + $0x1], 0  ;;  %s707_s9 = smov 0   ;;  %s709_s10 = smov 0  }
   0x5   :  { %s711_s11 = smov 0   ;;  %s713_s12 = smov 0  }
   0x6 LB: > { %s728_s13 = sadd.s32 4294967295, %s684_s12   ;;  %s437_s14 = sadd.s32 4294967294, %s684_s12   ;;  %s684_s12 = sphi %s713_s12, %s945_s12   ;;  %s680_s11 = sphi %s711_s11, %s944_s11   ;;  %s676_s10 = sphi %s709_s10, %s943_s10   ;;  %s672_s9 = sphi %s707_s9, %s942_s9  }
   0x7   : > { %s732_s15 = sadd.s32 1, %s684_s12   ;;  %s47_s16 = sadd.s32 1, %s680_s11 }
   0x8   : > { %s44_s17 = ssub.s32 %s684_s12, %s732_s15  ;;  %p54_p0 = scmp.ne.s32.totalorder %s680_s11, %s676_s10 }
   0x9   : > { %p45_p1 = scmp.eq.s32.totalorder %s44_s17, 0  ;;  %p55_p2 = scmp.eq.s32.totalorder %s684_s12, 0 }
   0xa   : > { %p60_p3 = scmp.ne.s32.totalorder %s676_s10, %s672_s9  ;;  %p923_p4 = scmp.eq.s32.totalorder %s728_s13, 0 }
   0xb   : > { %s744_s18 = scalar_select %p45_p1, %s680_s11, %s47_s16  }
   0xc   : > { %p746_p5 = por %p55_p2, %p54_p0  ;;  %p752_p6 = por %p923_p4, %p60_p3 }
   0xd   : > { %p84_p7 = scmp.eq.s32.totalorder %s728_s13, 2  ;;  %p90_p8 = scmp.eq.s32.totalorder %s437_s14, 2 }
   0xe   : > { %s929_s20 = scalar_select %p752_p6, 1, 0 }
   0xf   : > { %p438_p9 = scmp.ge.s32.totalorder %s684_s12, 1  ;;  %p97_p10 = scmp.lt.s32.totalorder %s684_s12, 4 }
  0x10   : > { %p759_p11 = por %p84_p7, %p54_p0  ;;  %p763_p12 = por %p90_p8, %p60_p3 }
  0x11   : > { %p767_p13 = pnand %p438_p9, %p97_p10  ;;  %s686_s24 = smov [#allocation2]  }
  0x12   : > { %s930_s21 = scalar_select %p759_p11, 1, 0 }
  0x13   : > { %s931_s22 = scalar_select %p763_p12, 1, 0 }
  0x14   : > { %s932_s23 = scalar_select %p767_p13, 1, 0 }
  0x15   : > { %p480_p1 = pneg %p767_p13  ;;  %s110_s25 = sshll.u32 %s686_s24, 4  ;;  %s111_s25 = int_to_ptr.vmem [resolvable:$true] %s110_s25 }
  0x16   : > { %p493_p2 = scmp.lt.s32.totalorder %s684_s12, 3  ;;  %s121_s27 = sand.u32 1, %s680_s11  }
  0x17   : > { %p776_p0 = pnand %p480_p1, %p923_p4  ;;  %s441_s29 = sshll.u32 %s121_s27, 7 }
  0x18   : > { %p783_p3 = pnand %p493_p2, %p746_p5  ;;  %s556_s4 = scalar_lea.hbm %s920_s0, 32 }
  0x19   : > { %p557_p7 = scmp.ne.s32.totalorder %s920_s0, %s556_s4  ;;  %p558_p8 = pneg %p776_p0 }
  0x1a   : > { %s934_s28 = scalar_select %p783_p3, 1, 0 }
  0x1b   : > { %p559_p9 = pnand %p558_p8, %p557_p7  ;;  %p563_p5 = scmp.lt.u32.totalorder %s556_s4, %s920_s0 }
  0x1d   : > { %p560_p10 = pneg %p559_p9 }
  0x1f   : > { %p565_p1 = pnand %p563_p5, %p560_p10 }
  0x21   : > { %568 = shalt.err (!%p565_p1)
}
  0x22   : > { %s569_s14 = scalar_lea.vmem %s111_s25, 32  ;;  %p577_p11 = scmp.lt.s32.totalorder %s111_s25, %s111_s25 }
  0x23   : > { %p570_p2 = scmp.ne.s32.totalorder %s111_s25, %s569_s14  ;;  %p578_p6 = scmp.lt.s32.totalorder %s569_s14, %s569_s14 }
  0x25   : > { %p572_p4 = pnand %p570_p2, %p558_p8  ;;  %p579_p13 = por %p578_p6, %p577_p11 }
  0x27   : > { %p573_p12 = pneg %p572_p4 }
  0x29   : > { %p580_p3 = pnand %p579_p13, %p573_p12 }
  0x2b   : > { %583 = shalt.err (!%p580_p3)
}
  0x2c   : > { %483 = dma.hbm_to_vmem [thread:$0]  (!%p776_p0), %s920_s0, 32, %s111_s25, [#allocation3]  }
  0x2d   : > { %s471_s19 = sshll.u32 %s684_s12, 11  ;;  %s125_s24 = scalar_lea.vmem [#allocation5], %s441_s29 }
  0x2e   : > { %s133_s30 = sshll.u32 %s125_s24, 4  ;;  %s807_s5 = scalar_lea.hbm %s921_s1, %s471_s19  ;;  %s809_s30 = int_to_ptr.vmem [resolvable:$true] %s133_s30 }
  0x2f   : > { %s811_s26 = scalar_lea.sflag [#allocation6], %s121_s27  ;;  %s584_s6 = scalar_lea.hbm %s807_s5, 2048 }
  0x30   : > { %p585_p4 = scmp.ne.s32.totalorder %s807_s5, %s584_s6  ;;  %p935_p6 = scmp.ne.s32.totalorder %s934_s28, 0 }
  0x31   : > { %s589_s7 = scalar_lea.hbm %s921_s1, 6144  ;;  %p590_p0 = scmp.lt.u32.totalorder %s807_s5, %s921_s1 }
  0x32   : > { %p586_p11 = pneg %p935_p6  ;;  %p591_p3 = scmp.lt.u32.totalorder %s589_s7, %s584_s6 }
  0x33   : > { %p593_p8 = scmp.lt.u32.totalorder %s584_s6, %s807_s5 }
  0x34   : > { %p587_p12 = pnand %p586_p11, %p585_p4  ;;  %p592_p7 = por %p591_p3, %p590_p0 }
  0x36   : > { %p588_p13 = pneg %p587_p12  ;;  %p594_p9 = por %p593_p8, %p592_p7 }
  0x38   : > { %p595_p10 = pnand %p594_p9, %p588_p13 }
  0x3a   : > { %598 = shalt.err (!%p595_p10)
}
  0x3b   : > { %s599_s27 = scalar_lea.vmem %s809_s30, 2048  ;;  %s687_s16 = smov [#allocation5]  }
  0x3c   : > { %p600_p5 = scmp.ne.s32.totalorder %s809_s30, %s599_s27  ;;  %s604_s17 = sshll.u32 %s687_s16, 4  ;;  %s605_s17 = int_to_ptr.vmem [resolvable:$false] %s604_s17 }
  0x3d   : > { %s606_s19 = scalar_lea.vmem %s605_s17, 4096  ;;  %p607_p4 = scmp.lt.s32.totalorder %s809_s30, %s605_s17 }
  0x3e   : > { %p602_p1 = pnand %p600_p5, %p586_p11  ;;  %p608_p12 = scmp.lt.s32.totalorder %s606_s19, %s599_s27 }
  0x40   : > { %p603_p2 = pneg %p602_p1  ;;  %p609_p0 = por %p608_p12, %p607_p4 }
  0x42   : > { %p610_p3 = pnand %p609_p0, %p603_p2 }
  0x44   : > { %613 = shalt.err (!%p610_p3)
}
  0x45   : > { %s688_s24 = smov 128   ;;  %s689_s3 = smov 8  }
  0x46   : > { %487 = dma.hbm_to_vmem [thread:$0]  (!%p935_p6), %s807_s5, 2048, %s809_s30, %s811_s26, %s688_s24, %s688_s24, %s689_s3  }
  0x47   : > { %p936_p11 = scmp.ne.s32.totalorder %s932_s23, 0 }
  0x48   : > { %p937_p13 = scmp.eq.s32.totalorder (!%p936_p11), %s728_s13, 0 }
  0x49   : > { %145 = sbr.rel (%p936_p11) target bundleno = 377 (0x179), region = 28 }
  0x50   : > { %659 = dma.done.wait (%p937_p13), [#allocation3], 32   ;;  %p938_p7 = pmov %p937_p13 }
  0x51   : > { %s846_s4 = sand.u32 1, %s676_s10   ;;  %p939_p6 = scmp.ne.s32.totalorder %s929_s20, 0 }
  0x52   : > { %661 = vsyncadd (%p938_p7), [#allocation3], 4294967264  ;;  %s447_s6 = sshll.u32 %s846_s4, 7  ;;  %s152_s25 = scalar_lea.sflag [#allocation6], %s846_s4 }
  0x53   : > { %s850_s29 = scalar_lea.vmem [#allocation5], %s447_s6 }
  0x54   : > { %663 = dma.done.wait (%p939_p6), %s152_s25, 2048  }
  0x55   : > { %665 = vsyncadd (%p939_p6), %s152_s25, 4294965248  ;;  %v532_v0 = vld [vmem:[%s850_s29 + $0x4] ss:$8 sps:$4 sm:$0xff]   ;;  %v534_v1 = vld [vmem:[%s850_s29] ss:$8 sps:$4 sm:$0xff]   ;;  %v207_v5 = vlaneseq  ;;  %s448_s20 = sshll.u32 %s846_s4, 1 }
  0x56   : > { %300 = vmatprep.subr.bf16.mxu0 %v532_v0  ;;  %v535_v2 = vld [vmem:[%s850_s29 + $0x14] ss:$8 sps:$4 sm:$0xff]   ;;  %v690_v3 = vmov 1966171168   ;;  %v537_v8 = vld [vmem:[%s850_s29 + $0x10] ss:$8 sps:$4 sm:$0xff]  }
  0x57   : > { %v205_v4 = vunpack.c.l.s4 %v690_v3  ;;  %301 = vmatpush1.bf16.xpose.msra.mxu0 %v534_v1  ;;  %v208_v7 = vshrl.u32 %v207_v5, 7  ;;  %v538_v9 = vld [vmem:[%s850_s29 + $0x24] ss:$8 sps:$4 sm:$0xff]   ;;  %v540_v14 = vld [vmem:[%s850_s29 + $0x20] ss:$8 sps:$4 sm:$0xff]   ;;  %s175_s23 = scalar_lea.vmem [#allocation7], %s448_s20 }
  0x58   : > { %302 = vmatprep.subr.bf16.mxu0 %v535_v2  ;;  %v449_v11 = vld.sshfl [vmem:[#allocation2] sm:$0x11 pattern:$0x75316420]  ;;  %v543_v16 = vld [vmem:[%s850_s29 + $0x30] ss:$8 sps:$4 sm:$0xff]  }
  0x59   : > { %v206_v6 = vunpack.c.0.s8 %v205_v4  ;;  %v203_v12 = vcombine.high %v449_v11, %v449_v11  ;;  %v541_v15 = vld [vmem:[%s850_s29 + $0x34] ss:$8 sps:$4 sm:$0xff]   ;;  %v544_v17 = vld [vmem:[%s850_s29 + $0x44] ss:$8 sps:$4 sm:$0xff]   ;;  %v546_v18 = vld [vmem:[%s850_s29 + $0x40] ss:$8 sps:$4 sm:$0xff]  }
  0x5a   : > { %v547_v19 = vld [vmem:[%s850_s29 + $0x54] ss:$8 sps:$4 sm:$0xff]   ;;  %v549_v20 = vld [vmem:[%s850_s29 + $0x50] ss:$8 sps:$4 sm:$0xff]   ;;  %v550_v21 = vld [vmem:[%s850_s29 + $0x64] ss:$8 sps:$4 sm:$0xff]  }
  0x5b   : > { %v209_v10 = vsub.s32 %v206_v6, %v208_v7  ;;  %v552_v22 = vld [vmem:[%s850_s29 + $0x60] ss:$8 sps:$4 sm:$0xff]   ;;  %v553_v23 = vld [vmem:[%s850_s29 + $0x74] ss:$8 sps:$4 sm:$0xff]   ;;  %v555_v24 = vld [vmem:[%s850_s29 + $0x70] ss:$8 sps:$4 sm:$0xff]  }
  0x5c   : > { %s355_s28 = sshll.u32 %s175_s23, 4  ;;  %s467_s30 = sshll.u32 %s728_s13, 5  ;;  %s874_s28 = int_to_ptr.vmem [resolvable:$true] %s355_s28 }
  0x5d   : > { %v217_v13 = vrot.slane %v203_v12, %v209_v10  ;;  %v210_v25 = vrot.slane %v449_v11, %v209_v10  ;;  %s879_s7 = scalar_lea.hbm %s922_s2, %s467_s30  ;;  %s342_s8 = scalar_lea.sflag [#allocation4], %s846_s4 }
  0x5e   : > { %s614_s14 = scalar_lea.vmem %s874_s28, 32  ;;  %p940_p9 = scmp.ne.s32.totalorder %s930_s21, 0 }
  0x5f   : > { %303 = vmatpush1.bf16.xpose.msra.mxu0 %v537_v8  ;;  %332 = vmatprep.mubr.bf16.mxu0 %v217_v13  ;;  %p615_p8 = scmp.ne.s32.totalorder %s874_s28, %s614_s14  ;;  %s691_s13 = smov [#allocation7]  }
  0x60   : > { %304 = vmatprep.subr.bf16.mxu0 %v538_v9  ;;  %s618_s27 = sshll.u32 %s691_s13, 4  ;;  %s619_s27 = int_to_ptr.vmem [resolvable:$false] %s618_s27 }
  0x61   : > { %p616_p10 = pnand %p615_p8, %p940_p9  ;;  %s620_s16 = scalar_lea.vmem %s619_s27, 64 }
  0x62   : > { %p621_p1 = scmp.lt.s32.totalorder %s874_s28, %s619_s27  ;;  %p622_p2 = scmp.lt.s32.totalorder %s620_s16, %s614_s14 }
  0x63   : > { %p617_p5 = pneg %p616_p10 }
  0x64   : > { %p623_p4 = por %p622_p2, %p621_p1 }
  0x66   : > { %p624_p12 = pnand %p623_p4, %p617_p5 }
  0x67   : > { %305 = vmatpush1.bf16.xpose.msra.mxu0 %v540_v14 }
  0x68   : > { %306 = vmatprep.subr.bf16.mxu0 %v541_v15 }
  0x6f   : > { %307 = vmatpush1.bf16.xpose.msra.mxu0 %v543_v16 }
  0x70   : > { %308 = vmatprep.subr.bf16.mxu0 %v544_v17 }
  0x77   : > { %309 = vmatpush1.bf16.xpose.msra.mxu0 %v546_v18 }
  0x78   : > { %310 = vmatprep.subr.bf16.mxu0 %v547_v19 }
  0x7f   : > { %311 = vmatpush1.bf16.xpose.msra.mxu0 %v549_v20 }
  0x80   : > { %312 = vmatprep.subr.bf16.mxu0 %v550_v21 }
  0x87   : > { %313 = vmatpush1.bf16.xpose.msra.mxu0 %v552_v22 }
  0x88   : > { %314 = vmatprep.subr.bf16.mxu0 %v553_v23 }
  0x8f   : > { %315 = vmatpush1.bf16.xpose.msra.mxu0 %v555_v24 }
  0x96   : > { %333 = vmatmul.mubr.bf16.vlgmr.msra.gmra.mrb[0].mxu0 %v210_v25 }
 0x169   : > { %v334_v26 = vpop.f32.mrb[0].mxu0 }
 0x16a   : > { %340 = vst [vmem:[%s175_s23] sm:$0x3] %v334_v26  ;;  %v336_v27 = vpop.f32.mrb[1].mxu0 }
 0x16b   : > { %v337_v28 = vpop.f32.mrb[2].mxu0 }
 0x16c   : > { %627 = shalt.err (!%p624_p12)
}
 0x16d   : > { %s628_s17 = scalar_lea.hbm %s879_s7, 32  ;;  %s632_s3 = scalar_lea.hbm %s922_s2, 96 }
 0x16e   : > { %p629_p0 = scmp.ne.s32.totalorder %s879_s7, %s628_s17  ;;  %p633_p13 = scmp.lt.u32.totalorder %s879_s7, %s922_s2 }
 0x16f   : > { %p634_p7 = scmp.lt.u32.totalorder %s632_s3, %s628_s17  ;;  %p636_p8 = scmp.lt.u32.totalorder %s628_s17, %s879_s7 }
 0x170   : > { %p630_p3 = pnand %p629_p0, %p940_p9 }
 0x171   : > { %p635_p6 = por %p634_p7, %p633_p13 }
 0x172   : > { %p631_p11 = pneg %p630_p3 }
 0x173   : > { %p637_p10 = por %p636_p8, %p635_p6 }
 0x175   : > { %p638_p5 = pnand %p637_p10, %p631_p11 }
 0x177   : > { %641 = shalt.err (!%p638_p5)
}
 0x178   : > { %478 = dma.vmem_to_hbm [thread:$0]  (%p940_p9), %s874_s28, 32, %s879_s7, %s342_s8   ;;  %v338_v29 = vpop.f32.mrb[3].mxu0 }
 0x179 PF: > { %p495_p1 = scmp.ge.s32.totalorder %s684_s12, 2  ;;  %s367_s25 = sand.u32 1, %s672_s9  }
 0x17a   : > { %p941_p2 = scmp.ne.s32.totalorder %s931_s22, 0  ;;  %s368_s29 = scalar_lea.sflag [#allocation4], %s367_s25 }
 0x17c   : > { %p489_p4 = pnand %p495_p1, %p941_p2 }
 0x17e   : > { %667 = dma.done.wait (!%p489_p4), %s368_s29, 32  }
 0x17f   : > { %669 = vsyncadd (!%p489_p4), %s368_s29, 4294967264  ;;  %p16_p12 = scmp.ge.s32.totalorder %s732_s15, 5   ;;  %s942_s9 = smov %s676_s10 }
 0x180   : > { %s943_s10 = smov %s680_s11  ;;  %s944_s11 = smov %s744_s18 }
 0x181   : > { %s945_s12 = smov %s732_s15  ;;  %18 = sbr.rel (!%p16_p12) target bundleno = 6 (0x6), region = 78 }
 0x188   :  { %373 = vsyncpa [#allocation3], 1 }
 0x189   :  { %375 = vsyncpa [#allocation3 + $0x1], 1 }
 0x18a   :  { %376 = vsyncpa [#allocation6], 1 }
 0x18b   :  { %378 = vsyncpa [#allocation6 + $0x1], 1 }
 0x18c   :  { %379 = vsyncpa [#allocation4], 1 }
 0x18d   :  { %381 = vsyncpa [#allocation4 + $0x1], 1 }

</bundles_post_ra>
